<compile_context>
chip_gen: v7x
topology: tpu7x:2x2x1
jax: 0.10.0
libtpu: 0.0.40
codegen_flags: <defaults>
</compile_context>

<pallas_src>
import jax
import jax.numpy as jnp
from jax.experimental import pallas as pl
from jax.experimental.pallas import tpu as pltpu


def _norm_linear_kernel(x_ref, w_ref, o_ref, wn_ref):
    # grid = (N blocks, M blocks); axis 1 (M) is the inner sequential axis, so
    # the normalized-W scratch written at i == 0 is valid for the whole N block.
    @pl.when(pl.program_id(1) == 0)
    def _():
        w = w_ref[...].astype(jnp.float32)
        sq = jnp.sum(w * w, axis=0, keepdims=True)              # (1, tn)
        # F.normalize: scale = 1 / max(||col||, 1e-12) == rsqrt(max(sq, 1e-24))
        inv = jax.lax.rsqrt(jnp.maximum(sq, 1e-24))             # EUP, not a VALU divide
        wn_ref[...] = (w * inv).astype(wn_ref.dtype)            # persist (bf16)

    x = x_ref[...].astype(wn_ref.dtype)                         # bf16 MXU operands
    o_ref[...] = jnp.dot(
        x, wn_ref[...], preferred_element_type=jnp.float32
    ).astype(o_ref.dtype)


def _round_up(v, m):
    return ((v + m - 1) // m) * m


def _vmem_budget_bytes():
    """Per-core VMEM budget for kernel buffers, with headroom for Mosaic."""
    cap = 64 << 20                                  # conservative (v7x per-TC)
    try:
        info = pltpu.get_tpu_info()
        cap = int(getattr(info, "vmem_capacity_bytes", cap))
    except Exception:
        pass
    return max(32 << 20, min(cap - (16 << 20), 100 << 20))


def _tile_footprint(tm, tn, k_p, x_itemsize, out_itemsize, wn_itemsize):
    x_buf = 2 * tm * k_p * x_itemsize       # double-buffered activations
    w_buf = 1 * k_p * tn * 4                # raw f32 W block, single-buffered
    o_buf = 2 * tm * tn * out_itemsize      # double-buffered output
    wn_buf = k_p * tn * wn_itemsize         # persistent normalized-W scratch
    return x_buf + w_buf + o_buf + wn_buf


def _pick_tiles(m, k_p, out_dim, x_itemsize, out_itemsize, wn_itemsize, budget):
    n_cap = _round_up(out_dim, 128)
    m_cap = _round_up(max(m, 1), 8)
    tn_cands = [t for t in (512, 256, 128) if t <= n_cap] or [n_cap]
    tm_cands = [t for t in (512, 256, 128) if t <= m_cap] or [m_cap]
    for tn in tn_cands:          # big tn first: x HBM re-reads scale ~1/tn
        for tm in tm_cands:      # then big tm: fewer grid steps / writebacks
            if _tile_footprint(tm, tn, k_p, x_itemsize, out_itemsize,
                               wn_itemsize) <= budget:
                return tm, tn
    return tm_cands[-1], tn_cands[-1]


def norm_linear(x, weight, *, compute_dtype=jnp.bfloat16, tm=None, tn=None):
    """x: (..., in_dim); weight: (in_dim, out_dim) float32."""
    in_dim, out_dim = weight.shape
    lead_shape = x.shape[:-1]
    out_dtype = x.dtype
    x2d = x.reshape(-1, in_dim)
    m = x2d.shape[0]

    k_p = _round_up(in_dim, 128)            # lane-aligned K (unmasked vld/vst)
    x_itemsize = jnp.dtype(x.dtype).itemsize
    out_itemsize = jnp.dtype(out_dtype).itemsize
    wn_itemsize = jnp.dtype(compute_dtype).itemsize

    budget = _vmem_budget_bytes()
    if tm is None or tn is None:
        a_tm, a_tn = _pick_tiles(m, k_p, out_dim, x_itemsize, out_itemsize,
                                 wn_itemsize, budget)
        tm = tm or a_tm
        tn = tn or a_tn

    m_p = _round_up(max(m, 1), tm)
    n_p = _round_up(out_dim, tn)            # lane-dense output stores

    # TODO(synk): the pad below materializes an extra HBM copy of x when
    # m / in_dim aren't tile-aligned; a remainder pallas_call would avoid it.
    if (m_p, k_p) != (m, in_dim):
        x2d = jnp.pad(x2d, ((0, m_p - m), (0, k_p - in_dim)))
    if (k_p, n_p) != (in_dim, out_dim):
        weight = jnp.pad(weight, ((0, k_p - in_dim), (0, n_p - out_dim)))

    grid = (n_p // tn, m_p // tm)           # N blocks outer, M blocks inner
    n_blocks = n_p // tn

    footprint = _tile_footprint(tm, tn, k_p, x_itemsize, out_itemsize, wn_itemsize)
    vmem_limit = int(min(max(footprint + (8 << 20), 32 << 20), budget + (8 << 20)))

    cost = pl.CostEstimate(
        flops=2 * m_p * k_p * n_p,
        transcendentals=n_p,                                   # one rsqrt per column
        bytes_accessed=(n_blocks * x2d.size * x2d.dtype.itemsize   # x re-read / N block
                        + weight.size * weight.dtype.itemsize
                        + m_p * n_p * out_itemsize),
    )

    out2d = pl.pallas_call(
        _norm_linear_kernel,
        out_shape=jax.ShapeDtypeStruct((m_p, n_p), out_dtype),
        grid_spec=pltpu.PrefetchScalarGridSpec(
            num_scalar_prefetch=0,
            grid=grid,
            in_specs=[
                # x row-block: changes every M step -> keep default double-buffer.
                pl.BlockSpec((tm, k_p), lambda j, i: (i, 0)),
                # raw f32 W column-block: changes only per N block and is read
                # only at i == 0 -> single buffer to free K*tn*4 bytes of VMEM.
                pl.BlockSpec((k_p, tn), lambda j, i: (0, j),
                             pipeline_mode=pl.Buffered(1)),
            ],
            out_specs=pl.BlockSpec((tm, tn), lambda j, i: (i, j)),
            scratch_shapes=[pltpu.VMEM((k_p, tn), compute_dtype)],  # normalized W
        ),
        compiler_params=pltpu.CompilerParams(
            dimension_semantics=("parallel", "arbitrary"),
            vmem_limit_bytes=vmem_limit),
        cost_estimate=cost,
    )(x2d, weight)

    return out2d[:m, :out_dim].reshape(*lead_shape, out_dim)


def init_norm_linear_weight(key, in_dim, out_dim):
    # nn.init.xavier_uniform_(W, gain=calculate_gain('relu')) on (in_dim, out_dim):
    # fan_in + fan_out = in_dim + out_dim, gain = sqrt(2).
    gain = jnp.sqrt(2.0)
    bound = gain * jnp.sqrt(6.0 / (in_dim + out_dim))
    return jax.random.uniform(key, (in_dim, out_dim), jnp.float32,
                              minval=-bound, maxval=bound)


if __name__ == "__main__":
    key = jax.random.PRNGKey(0)
    k_w, k_x = jax.random.split(key)

    batch, seq, in_dim, out_dim = 2, 8, 32, 64
    weight = init_norm_linear_weight(k_w, in_dim, out_dim)
    x = jax.random.normal(k_x, (batch, seq, in_dim), jnp.float32)

    out = jax.block_until_ready(norm_linear(x, weight))

    # Pure-JAX f32 reference of the module semantics.
    w_ref = weight / jnp.maximum(
        jnp.sqrt(jnp.sum(weight * weight, axis=0, keepdims=True)), 1e-12)
    ref = jnp.einsum("bsi,io->bso", x, w_ref)
    assert out.shape == (batch, seq, out_dim)
    # bf16 MXU operands (f32 accumulation) -> slightly looser tolerance vs f32 ref.
    assert jnp.allclose(out, ref, atol=5e-2, rtol=5e-2), (
        float(jnp.max(jnp.abs(out - ref))))

    print("KERNEL_OK")
</pallas_src>

<mosaic_0001>
module attributes {stable_mosaic.version = 11 : i64} {
  func.func @_norm_linear_kernel(%arg0: i32, %arg1: i32, %arg2: memref<16x128xf32, #tpu.memory_space<vmem>>, %arg3: memref<128x128xf32, #tpu.memory_space<vmem>>, %arg4: memref<16x128xf32, #tpu.memory_space<vmem>>, %arg5: memref<128x128xbf16, #tpu.memory_space<vmem>>) attributes {dimension_semantics = [#tpu.dimension_semantics<parallel>, #tpu.dimension_semantics<arbitrary>], iteration_bounds = array<i64: 1, 1>, scalar_prefetch = 0 : i64, scratch_operands = 1 : i64, tpu.core_type = #tpu.core_type<tc>, window_params = [{transform_indices = @transform_0, window_bounds = array<i64: 16, 128>}, {pipeline_mode = #tpu.pipeline_mode<synchronous>, transform_indices = @transform_1, window_bounds = array<i64: 128, 128>}, {transform_indices = @transform_2, window_bounds = array<i64: 16, 128>}]} {
    %c0_i32 = arith.constant 0 : i32
    %0 = arith.cmpi eq, %arg1, %c0_i32 : i32
    %1 = arith.extui %0 : i1 to i32
    %c0_i32_0 = arith.constant 0 : i32
    %2 = arith.cmpi ne, %1, %c0_i32_0 : i32
    scf.if %2 {
      %c0_6 = arith.constant 0 : index
      %c0_7 = arith.constant 0 : index
      %8 = vector.load %arg3[%c0_6, %c0_7] : memref<128x128xf32, #tpu.memory_space<vmem>>, vector<128x128xf32>
      %9 = arith.mulf %8, %8 : vector<128x128xf32>
      %cst_8 = arith.constant dense<0.000000e+00> : vector<128xf32>
      %10 = vector.multi_reduction <add>, %9, %cst_8 [0] : vector<128x128xf32> to vector<128xf32>
      %11 = vector.shape_cast %10 : vector<128xf32> to vector<1x128xf32>
      %cst_9 = arith.constant 1.000000e-24 : f32
      %12 = vector.broadcast %cst_9 : f32 to vector<1x128xf32>
      %13 = arith.maximumf %11, %12 : vector<1x128xf32>
      %14 = math.rsqrt %13 : vector<1x128xf32>
      %15 = vector.broadcast %14 : vector<1x128xf32> to vector<128x128xf32>
      %16 = arith.mulf %8, %15 : vector<128x128xf32>
      %17 = arith.truncf %16 : vector<128x128xf32> to vector<128x128xbf16>
      %c0_10 = arith.constant 0 : index
      %c0_11 = arith.constant 0 : index
      %18 = vector.load %arg5[%c0_10, %c0_11] : memref<128x128xbf16, #tpu.memory_space<vmem>>, vector<128x128xbf16>
      tpu.vector_store %arg5[%c0_10, %c0_11], %17 {strides = array<i32>} : memref<128x128xbf16, #tpu.memory_space<vmem>>, vector<128x128xbf16>,
    } else {
    }
    %c0 = arith.constant 0 : index
    %c0_1 = arith.constant 0 : index
    %3 = vector.load %arg2[%c0, %c0_1] : memref<16x128xf32, #tpu.memory_space<vmem>>, vector<16x128xf32>
    %4 = arith.truncf %3 : vector<16x128xf32> to vector<16x128xbf16>
    %c0_2 = arith.constant 0 : index
    %c0_3 = arith.constant 0 : index
    %5 = vector.load %arg5[%c0_2, %c0_3] : memref<128x128xbf16, #tpu.memory_space<vmem>>, vector<128x128xbf16>
    %cst = arith.constant dense<0.000000e+00> : vector<16x128xf32>
    %6 = tpu.matmul %4, %5, %cst {dimension_numbers = #tpu.dot_dimension_numbers<[1], [0], [0], [1], [0, 0, 1, 1], [], []>} : vector<16x128xbf16>, vector<128x128xbf16>, vector<16x128xf32> -> vector<16x128xf32>
    %c0_4 = arith.constant 0 : index
    %c0_5 = arith.constant 0 : index
    %7 = vector.load %arg4[%c0_4, %c0_5] : memref<16x128xf32, #tpu.memory_space<vmem>>, vector<16x128xf32>
    tpu.vector_store %arg4[%c0_4, %c0_5], %6 {strides = array<i32>} : memref<16x128xf32, #tpu.memory_space<vmem>>, vector<16x128xf32>,
    return
  }
  func.func @transform_0(%arg0: i32, %arg1: i32) -> (i32, i32) {
    %c0_i32 = arith.constant 0 : i32
    %c0_i32_0 = arith.constant 0 : i32
    return %arg1, %c0_i32 : i32, i32
  }
  func.func @transform_1(%arg0: i32, %arg1: i32) -> (i32, i32) {
    %c0_i32 = arith.constant 0 : i32
    %c0_i32_0 = arith.constant 0 : i32
    return %c0_i32, %arg0 : i32, i32
  }
  func.func @transform_2(%arg0: i32, %arg1: i32) -> (i32, i32) {
    %c0_i32 = arith.constant 0 : i32
    return %arg1, %arg0 : i32, i32
  }
}

</mosaic_0001>

<bundles_post_ra>
// kernel: tpu_custom_call.1
= control target key start
LH: loop header
LB: loop body
LE: loop exit
PB: predicated region body
PF: predicated region fallthrough
CT: control target
= control target key end

     0   :  { %7 = vsyncpa [#allocation4], 0  ;;  %s390_s0 = inlined_call_operand.hbm [shape: f32[16,128], index: 0, kind: input, shape index: {}]   ;;  %s391_s1 = inlined_call_operand.hbm [shape: f32[128,128], index: 1, kind: input, shape index: {}]   ;;  %s392_s2 = inlined_call_operand.hbm [shape: f32[16,128], index: 2, kind: output, shape index: {}]  }
   0x1   :  { %8 = vsyncpa [#allocation7], 0 }
   0x2   :  { %9 = vsyncpa [#allocation5], 0  ;;  %s314_s9 = smov [#allocation3]   ;;  %s242_s13 = scalar_lea.hbm %s390_s0, 256 }
   0x3   :  { %s15_s10 = sshll.u32 %s314_s9, 4  ;;  %p243_p0 = scmp.ne.s32.totalorder %s390_s0, %s242_s13  ;;  %s16_s10 = int_to_ptr.vmem [resolvable:$true] %s15_s10 }
   0x4   :  { %p246_p1 = scmp.lt.u32.totalorder %s242_s13, %s390_s0 }
   0x6   :  { %p248_p2 = pnand %p246_p1, %p243_p0 }
   0x8   :  { %251 = shalt.err (!%p248_p2)
}
   0x9   :  { %s252_s18 = scalar_lea.vmem %s16_s10, 256  ;;  %p257_p4 = scmp.lt.s32.totalorder %s16_s10, %s16_s10 }
   0xa   :  { %p253_p3 = scmp.ne.s32.totalorder %s16_s10, %s252_s18  ;;  %p258_p5 = scmp.lt.s32.totalorder %s252_s18, %s252_s18 }
   0xc   :  { %p259_p6 = por %p258_p5, %p257_p4 }
   0xe   :  { %p260_p7 = pnand %p259_p6, %p253_p3 }
  0x10   :  { %263 = shalt.err (!%p260_p7)
}
  0x11   :  { %s315_s19 = smov 128   ;;  %s316_s20 = smov 8  }
  0x12   :  { %21 = dma.hbm_to_vmem [thread:$0]  %s390_s0, 256, %s16_s10, [#allocation4], %s315_s19, %s315_s19, %s316_s20  }
  0x13   :  { %s317_s23 = smov [#allocation6]   ;;  %s264_s27 = scalar_lea.hbm %s391_s1, 2048 }
  0x14   :  { %s27_s24 = sshll.u32 %s317_s23, 4  ;;  %p265_p8 = scmp.ne.s32.totalorder %s391_s1, %s264_s27  ;;  %s28_s24 = int_to_ptr.vmem [resolvable:$true] %s27_s24 }
  0x15   :  { %p268_p9 = scmp.lt.u32.totalorder %s264_s27, %s391_s1 }
  0x17   :  { %p270_p10 = pnand %p268_p9, %p265_p8 }
  0x19   :  { %273 = shalt.err (!%p270_p10)
}
  0x1a   :  { %s274_s4 = scalar_lea.vmem %s28_s24, 2048  ;;  %p279_p12 = scmp.lt.s32.totalorder %s28_s24, %s28_s24 }
  0x1b   :  { %p275_p11 = scmp.ne.s32.totalorder %s28_s24, %s274_s4  ;;  %p280_p13 = scmp.lt.s32.totalorder %s274_s4, %s274_s4 }
  0x1d   :  { %p281_p0 = por %p280_p13, %p279_p12 }
  0x1f   :  { %p282_p1 = pnand %p281_p0, %p275_p11 }
  0x21   :  { %285 = shalt.err (!%p282_p1)
}
  0x22   :  { %33 = dma.hbm_to_vmem [thread:$0]  %s391_s1, 2048, %s28_s24, [#allocation7], %s315_s19, %s315_s19, %s316_s20  }
  0x23   :  { %308 = dma.done.wait [#allocation4], 256  }
  0x24   :  { %309 = vsyncadd [#allocation4], 4294967040 }
  0x25   :  { %310 = dma.done.wait [#allocation7], 2048  }
  0x26   :  { %311 = vsyncadd [#allocation7], 4294965248  ;;  %v318_v0 = vmov 0.0   ;;  %vm319_vm0 = vmmov 0   ;;  %v45_v1 = vld [vmem:[#allocation6] sm:$0xff]  ;;  %v46_v2 = vld [vmem:[#allocation6 + $0x8] sm:$0xff] }
  0x27   :  { %213 = vmatprep.subr.bf16.mxu0 %v318_v0  ;;  %229 = vmatprep.mubr.msk.bf16.mxu0 %vm319_vm0, %v318_v0  ;;  %v47_v3 = vld [vmem:[#allocation6 + $0x10] sm:$0xff]  ;;  %v48_v4 = vld [vmem:[#allocation6 + $0x18] sm:$0xff]  ;;  %v61_v5 = vmul.f32 %v45_v1, %v45_v1  ;;  %v62_v6 = vmul.f32 %v46_v2, %v46_v2  ;;  %v49_v8 = vld [vmem:[#allocation6 + $0x20] sm:$0xff]  ;;  %s320_s1 = smov [#allocation8]  }
  0x28   :  { %v63_v7 = vmul.f32 %v47_v3, %v47_v3  ;;  %v64_v9 = vmul.f32 %v48_v4, %v48_v4  ;;  %v50_v11 = vld [vmem:[#allocation6 + $0x28] sm:$0xff]  ;;  %v65_v12 = vmul.f32 %v49_v8, %v49_v8  ;;  %v51_v14 = vld [vmem:[#allocation6 + $0x30] sm:$0xff]  ;;  %v52_v17 = vld [vmem:[#allocation6 + $0x38] sm:$0xff]  ;;  %s191_s6 = sshll.u32 %s320_s1, 4  ;;  %s192_s6 = int_to_ptr.vmem [resolvable:$true] %s191_s6 }
  0x29   :  { %v77_v10 = vadd.f32 %v62_v6, %v61_v5  ;;  %v66_v15 = vmul.f32 %v50_v11, %v50_v11  ;;  %v67_v18 = vmul.f32 %v51_v14, %v51_v14  ;;  %v53_v20 = vld [vmem:[#allocation6 + $0x40] sm:$0xff]  ;;  %v68_v21 = vmul.f32 %v52_v17, %v52_v17  ;;  %v54_v23 = vld [vmem:[#allocation6 + $0x48] sm:$0xff]  ;;  %v55_v26 = vld [vmem:[#allocation6 + $0x50] sm:$0xff]  ;;  %s286_s7 = scalar_lea.vmem %s192_s6, 256  ;;  %p291_p3 = scmp.lt.s32.totalorder %s192_s6, %s192_s6 }
  0x2a   :  { %v69_v24 = vmul.f32 %v53_v20, %v53_v20  ;;  %v70_v27 = vmul.f32 %v54_v23, %v54_v23  ;;  %v56_v29 = vld [vmem:[#allocation6 + $0x58] sm:$0xff]  ;;  %v71_v30 = vmul.f32 %v55_v26, %v55_v26  ;;  %v57_v32 = vld [vmem:[#allocation6 + $0x60] sm:$0xff]  ;;  %v58_v35 = vld [vmem:[#allocation6 + $0x68] sm:$0xff]  ;;  %p287_p2 = scmp.ne.s32.totalorder %s192_s6, %s286_s7  ;;  %p292_p4 = scmp.lt.s32.totalorder %s286_s7, %s286_s7 }
  0x2b   :  { %v78_v13 = vadd.f32 %v77_v10, %v63_v7  ;;  %v72_v33 = vmul.f32 %v56_v29, %v56_v29  ;;  %v73_v36 = vmul.f32 %v57_v32, %v57_v32  ;;  %v59_v38 = vld [vmem:[#allocation6 + $0x70] sm:$0xff]  ;;  %v74_v39 = vmul.f32 %v58_v35, %v58_v35  ;;  %v60_v41 = vld [vmem:[#allocation6 + $0x78] sm:$0xff] }
  0x2c   :  { %v75_v42 = vmul.f32 %v59_v38, %v59_v38  ;;  %v76_v44 = vmul.f32 %v60_v41, %v60_v41  ;;  %p293_p5 = por %p292_p4, %p291_p3 }
  0x2d   :  { %v79_v16 = vadd.f32 %v78_v13, %v64_v9 }
  0x2e   :  { %p294_p6 = pnand %p293_p5, %p287_p2 }
  0x2f   :  { %v80_v19 = vadd.f32 %v79_v16, %v65_v12 }
  0x31   :  { %v81_v22 = vadd.f32 %v80_v19, %v66_v15 }
  0x33   :  { %v82_v25 = vadd.f32 %v81_v22, %v67_v18  ;;  %v133_v18 = vld [vmem:[#allocation3 + $0x8] sm:$0xff] }
  0x35   :  { %v83_v28 = vadd.f32 %v82_v25, %v68_v21 }
  0x37   :  { %v84_v31 = vadd.f32 %v83_v28, %v69_v24 }
  0x39   :  { %v85_v34 = vadd.f32 %v84_v31, %v70_v27 }
  0x3b   :  { %v86_v37 = vadd.f32 %v85_v34, %v71_v30 }
  0x3d   :  { %v87_v40 = vadd.f32 %v86_v37, %v72_v33 }
  0x3f   :  { %v88_v43 = vadd.f32 %v87_v40, %v73_v36 }
  0x41   :  { %v89_v45 = vadd.f32 %v88_v43, %v74_v39 }
  0x43   :  { %v90_v46 = vadd.f32 %v89_v45, %v75_v42 }
  0x45   :  { %v91_v47 = vadd.f32 %v90_v46, %v76_v44 }
  0x47   :  { %v92_v48 = vrot.slane %v91_v47, 4 }
  0x49   :  { %v93_v49 = vadd.f32 %v92_v48, %v91_v47 }
  0x4b   :  { %v94_v50 = vrot.slane %v93_v49, 2 }
  0x4d   :  { %v95_v51 = vadd.f32 %v94_v50, %v93_v49 }
  0x4f   :  { %v96_v52 = vrot.slane %v95_v51, 1 }
  0x51   :  { %v97_v53 = vadd.f32 %v96_v52, %v95_v51 }
  0x53   :  { %v98_v54 = vmax.f32 %v97_v53, 1e-24 }
  0x55   :  { %240 = vrsqrt.f32 %v98_v54 }
  0x5f   :  { %v241_v55 = vpop.eup %240 }
  0x60   :  { %v100_v56 = vmul.f32 %v241_v55, %v45_v1  ;;  %v101_v57 = vmul.f32 %v241_v55, %v46_v2  ;;  %v102_v58 = vmul.f32 %v241_v55, %v47_v3  ;;  %v103_v59 = vmul.f32 %v241_v55, %v48_v4 }
  0x61   :  { %v104_v62 = vmul.f32 %v241_v55, %v49_v8  ;;  %v105_v63 = vmul.f32 %v241_v55, %v50_v11  ;;  %v106_v6 = vmul.f32 %v241_v55, %v51_v14  ;;  %v107_v7 = vmul.f32 %v241_v55, %v52_v17  ;;  %v132_v17 = vld [vmem:[#allocation3] sm:$0xff] }
  0x62   :  { %v116_v60 = vpack.c.bf16 %v101_v57, %v100_v56  ;;  %v117_v61 = vpack.c.bf16 %v103_v59, %v102_v58  ;;  %v108_v10 = vmul.f32 %v241_v55, %v53_v20  ;;  %v109_v1 = vmul.f32 %v241_v55, %v54_v23 }
  0x63   :  { %v118_v5 = vpack.c.bf16 %v105_v63, %v104_v62  ;;  %v119_v9 = vpack.c.bf16 %v107_v7, %v106_v6  ;;  %v110_v3 = vmul.f32 %v241_v55, %v55_v26  ;;  %v111_v4 = vmul.f32 %v241_v55, %v56_v29 }
  0x64   :  { %214 = vmatpush3.bf16.msra.mxu0 %v116_v60  ;;  %v120_v2 = vpack.c.bf16 %v109_v1, %v108_v10  ;;  %v112_v11 = vmul.f32 %v241_v55, %v57_v32  ;;  %v113_v12 = vmul.f32 %v241_v55, %v58_v35  ;;  %v114_v14 = vmul.f32 %v241_v55, %v59_v38 }
  0x65   :  { %215 = vmatprep.subr.bf16.mxu0 %v318_v0  ;;  %v121_v8 = vpack.c.bf16 %v111_v4, %v110_v3  ;;  %v115_v15 = vmul.f32 %v241_v55, %v60_v41  ;;  %v134_v19 = vpack.c.bf16 %v133_v18, %v132_v17 }
  0x66   :  { %v122_v13 = vpack.c.bf16 %v113_v12, %v112_v11 }
  0x67   :  { %v123_v16 = vpack.c.bf16 %v115_v15, %v114_v14 }
  0x68   :  { %216 = vmatpush3.bf16.msra.mxu0 %v117_v61 }
  0x69   :  { %217 = vmatprep.subr.bf16.mxu0 %v318_v0 }
  0x6c   :  { %218 = vmatpush3.bf16.msra.mxu0 %v118_v5 }
  0x6d   :  { %219 = vmatprep.subr.bf16.mxu0 %v318_v0 }
  0x70   :  { %220 = vmatpush3.bf16.msra.mxu0 %v119_v9 }
  0x71   :  { %221 = vmatprep.subr.bf16.mxu0 %v318_v0 }
  0x74   :  { %222 = vmatpush3.bf16.msra.mxu0 %v120_v2 }
  0x75   :  { %223 = vmatprep.subr.bf16.mxu0 %v318_v0 }
  0x78   :  { %224 = vmatpush3.bf16.msra.mxu0 %v121_v8 }
  0x79   :  { %225 = vmatprep.subr.bf16.mxu0 %v318_v0 }
  0x7c   :  { %226 = vmatpush3.bf16.msra.mxu0 %v122_v13 }
  0x7d   :  { %227 = vmatprep.subr.bf16.mxu0 %v318_v0 }
  0x80   :  { %228 = vmatpush3.bf16.msra.mxu0 %v123_v16 }
  0x83   :  { %230 = vmatmul.mubr.bf16.vlgmr.msra.gmra.mrb[0].mxu0 %v134_v19 }
 0x156   :  { %v177_v20 = vpop.f32.mrb[0].mxu0 }
 0x157   :  { %184 = vst [vmem:[#allocation8] sm:$0xff] %v177_v20  ;;  %v231_v21 = vpop.f32.mrb[1].mxu0 }
 0x158   :  { %v180_v22 = vpop.f32.mrb[2].mxu0 }
 0x159   :  { %185 = vst [vmem:[#allocation8 + $0x8] sm:$0xff] %v180_v22  ;;  %v232_v23 = vpop.f32.mrb[3].mxu0 }
 0x15a   :  { %297 = shalt.err (!%p294_p6)
}
 0x15b   :  { %s298_s10 = scalar_lea.hbm %s392_s2, 256 }
 0x15c   :  { %p299_p7 = scmp.ne.s32.totalorder %s392_s2, %s298_s10  ;;  %p302_p8 = scmp.lt.u32.totalorder %s298_s10, %s392_s2 }
 0x15e   :  { %p304_p9 = pnand %p302_p8, %p299_p7 }
 0x160   :  { %307 = shalt.err (!%p304_p9)
}
 0x161   :  { %197 = dma.vmem_to_hbm [thread:$0]  %s192_s6, 256, %s392_s2, [#allocation5], %s315_s19, %s315_s19, %s316_s20  }
 0x162   :  { %312 = dma.done.wait [#allocation5], 256  }
 0x163   :  { %313 = vsyncadd [#allocation5], 4294967040 }
 0x164   :  { %201 = vsyncpa [#allocation4], 1 }
 0x165   :  { %202 = vsyncpa [#allocation7], 1 }
 0x166   :  { %203 = vsyncpa [#allocation5], 1 }

</bundles_post_ra>
